<compile_context>
chip_gen: v7x
topology: tpu7x:2x2x1
jax: 0.10.0
libtpu: 0.0.40
codegen_flags: <defaults>
</compile_context>

<pallas_src>
from functools import partial

import jax
import jax.numpy as jnp
from jax.experimental import pallas as pl
from jax.experimental.pallas import tpu as pltpu


def actor_critic_kernel(x_ref, w1_ref, b1_ref, wh_ref, bh_ref, out_ref, *,
                        action_dim):
    # Shared trunk: hidden = relu(x @ W1 + b1)   (HIDDEN padded to 128 lanes;
    # padded columns of W1/b1 are zero so padded hidden activations are 0).
    x = x_ref[...]
    h = jnp.dot(x, w1_ref[...], preferred_element_type=jnp.float32) + b1_ref[...]
    h = jnp.maximum(h, 0.0)

    # Fused heads: one matmul producing [actor logits | critic value | pad]
    # across 128 dense lanes.
    fused = jnp.dot(h, wh_ref[...], preferred_element_type=jnp.float32) + bh_ref[...]

    # Softmax only over the actor-logit lanes; mask value/pad lanes out of the
    # max/sum so they can't pollute the denominator.
    lane = jax.lax.broadcasted_iota(jnp.int32, fused.shape, dimension=1)
    is_logit = lane < action_dim
    masked = jnp.where(is_logit, fused, jnp.float32(-1e30))
    m = jnp.max(masked, axis=-1, keepdims=True)
    e = jnp.exp(masked - m)                      # padded lanes -> exp(-huge) = 0
    denom = jnp.sum(e, axis=-1, keepdims=True)
    inv = pl.reciprocal(denom, approx=True)      # EUP slot (free here)
    inv = inv * (2.0 - denom * inv)              # one Newton step -> f32 accuracy
    probs = e * inv

    # Lane-dense store: probs in logit lanes, raw fused value elsewhere
    # (lane `action_dim` therefore holds the critic value).
    out_ref[...] = jnp.where(is_logit, probs, fused)


def pack_params(w1, b1, wa, ba, wc, bc, *, hidden_pad=128, out_pad=128):
    """Zero-pad hidden dim to `hidden_pad` lanes and fuse actor|critic heads
    into a single (hidden_pad, out_pad) weight.  Done once at init time."""
    state_dim, hidden = w1.shape
    action_dim = wa.shape[1]
    assert hidden <= hidden_pad and action_dim + 1 <= out_pad

    w1p = jnp.zeros((state_dim, hidden_pad), jnp.float32).at[:, :hidden].set(w1)
    b1p = jnp.zeros((1, hidden_pad), jnp.float32).at[0, :hidden].set(b1)

    whp = jnp.zeros((hidden_pad, out_pad), jnp.float32)
    whp = whp.at[:hidden, :action_dim].set(wa)
    whp = whp.at[:hidden, action_dim].set(wc[:, 0])
    bhp = jnp.zeros((1, out_pad), jnp.float32)
    bhp = bhp.at[0, :action_dim].set(ba)
    bhp = bhp.at[0, action_dim].set(bc[0])
    return w1p, b1p, whp, bhp


def _pick_block_b(b_pad):
    for cand in (512, 256, 128, 64, 32, 16, 8):
        if b_pad % cand == 0:
            return cand
    return b_pad


def actor_critic_forward(x, packed_params, *, action_dim):
    """x: (B, state_dim) f32. Returns (action_probs (B, action_dim), value (B, 1))."""
    w1p, b1p, whp, bhp = packed_params
    B, state_dim = x.shape
    hidden_pad = w1p.shape[1]
    out_pad = whp.shape[1]

    # Pad batch to a sublane multiple and tile it with a parallel grid so
    # large batches amortize fixed overhead (and use both TCs on v7x).
    b_pad = max(8, ((B + 7) // 8) * 8)
    block_b = _pick_block_b(b_pad)
    grid = (b_pad // block_b,)
    x_p = x if b_pad == B else jnp.pad(x, ((0, b_pad - B), (0, 0)))

    flops = 2 * b_pad * (state_dim * hidden_pad + hidden_pad * out_pad)
    bytes_accessed = 4 * (b_pad * state_dim + state_dim * hidden_pad + hidden_pad
                          + hidden_pad * out_pad + out_pad + b_pad * out_pad)

    out = pl.pallas_call(
        partial(actor_critic_kernel, action_dim=action_dim),
        out_shape=jax.ShapeDtypeStruct((b_pad, out_pad), jnp.float32),
        grid=grid,
        in_specs=[
            pl.BlockSpec((block_b, state_dim), lambda i: (i, 0)),   # x rows
            pl.BlockSpec((state_dim, hidden_pad), lambda i: (0, 0)),  # W1 (resident)
            pl.BlockSpec((1, hidden_pad), lambda i: (0, 0)),          # b1
            pl.BlockSpec((hidden_pad, out_pad), lambda i: (0, 0)),    # fused head W
            pl.BlockSpec((1, out_pad), lambda i: (0, 0)),             # fused head b
        ],
        out_specs=pl.BlockSpec((block_b, out_pad), lambda i: (i, 0)),
        compiler_params=pltpu.CompilerParams(
            dimension_semantics=("parallel",)),
        cost_estimate=pl.CostEstimate(
            flops=flops,
            transcendentals=b_pad * out_pad,
            bytes_accessed=bytes_accessed),
    )(x_p, w1p, b1p, whp, bhp)

    probs = out[:B, :action_dim]
    value = out[:B, action_dim:action_dim + 1]
    return probs, value


def init_params(key, state_dim, hidden, action_dim):
    """Deterministic init mimicking nn.Linear's U(-1/sqrt(fan_in), 1/sqrt(fan_in)).
    Weights returned already transposed to (in, out)."""
    ks = jax.random.split(key, 6)

    def lin(kw, kb, fan_in, fan_out):
        bound = 1.0 / jnp.sqrt(jnp.float32(fan_in))
        w = jax.random.uniform(kw, (fan_in, fan_out), jnp.float32, -bound, bound)
        b = jax.random.uniform(kb, (fan_out,), jnp.float32, -bound, bound)
        return w, b

    w1, b1 = lin(ks[0], ks[1], state_dim, hidden)
    wa, ba = lin(ks[2], ks[3], hidden, action_dim)
    wc, bc = lin(ks[4], ks[5], hidden, 1)
    return w1, b1, wa, ba, wc, bc


def reference_forward(x, w1, b1, wa, ba, wc, bc):
    h = jax.nn.relu(x @ w1 + b1)
    probs = jax.nn.softmax(h @ wa + ba, axis=-1)
    value = h @ wc + bc
    return probs, value


if __name__ == "__main__":
    B, STATE_DIM, HIDDEN, ACTION_DIM = 8, 16, 64, 4

    key = jax.random.PRNGKey(0)
    k_x, k_p = jax.random.split(key)
    x = jax.random.normal(k_x, (B, STATE_DIM), dtype=jnp.float32)
    params = init_params(k_p, STATE_DIM, HIDDEN, ACTION_DIM)

    # One-time pack: pad hidden/head widths to 128 lanes, fuse actor|critic.
    packed = pack_params(*params, hidden_pad=128, out_pad=128)

    probs, value = actor_critic_forward(x, packed, action_dim=ACTION_DIM)
    probs = jax.block_until_ready(probs)
    value = jax.block_until_ready(value)

    # Cross-check against pure-JAX reference on the unpadded params.
    ref_probs, ref_value = reference_forward(x, *params)
    assert probs.shape == (B, ACTION_DIM) and value.shape == (B, 1)
    assert jnp.allclose(probs, ref_probs, atol=1e-5, rtol=1e-5)
    assert jnp.allclose(value, ref_value, atol=1e-5, rtol=1e-5)
    assert jnp.allclose(jnp.sum(probs, axis=-1), 1.0, atol=1e-5)

    print("KERNEL_OK")
</pallas_src>

<mosaic_0001>
module attributes {stable_mosaic.version = 11 : i64} {
  func.func @actor_critic_kernel(%arg0: i32, %arg1: memref<8x16xf32, #tpu.memory_space<vmem>>, %arg2: memref<16x128xf32, #tpu.memory_space<vmem>>, %arg3: memref<1x128xf32, #tpu.memory_space<vmem>>, %arg4: memref<128x128xf32, #tpu.memory_space<vmem>>, %arg5: memref<1x128xf32, #tpu.memory_space<vmem>>, %arg6: memref<8x128xf32, #tpu.memory_space<vmem>>) attributes {dimension_semantics = [#tpu.dimension_semantics<parallel>], iteration_bounds = array<i64: 1>, scalar_prefetch = 0 : i64, scratch_operands = 0 : i64, tpu.core_type = #tpu.core_type<tc>, window_params = [{transform_indices = @transform_0, window_bounds = array<i64: 8, 16>}, {pipeline_mode = #tpu.pipeline_mode<synchronous>, transform_indices = @transform_1, window_bounds = array<i64: 16, 128>}, {pipeline_mode = #tpu.pipeline_mode<synchronous>, transform_indices = @transform_2, window_bounds = array<i64: 1, 128>}, {pipeline_mode = #tpu.pipeline_mode<synchronous>, transform_indices = @transform_3, window_bounds = array<i64: 128, 128>}, {pipeline_mode = #tpu.pipeline_mode<synchronous>, transform_indices = @transform_4, window_bounds = array<i64: 1, 128>}, {transform_indices = @transform_5, window_bounds = array<i64: 8, 128>}]} {
    %c0 = arith.constant 0 : index
    %c0_0 = arith.constant 0 : index
    %0 = vector.load %arg1[%c0, %c0_0] : memref<8x16xf32, #tpu.memory_space<vmem>>, vector<8x16xf32>
    %c0_1 = arith.constant 0 : index
    %c0_2 = arith.constant 0 : index
    %1 = vector.load %arg2[%c0_1, %c0_2] : memref<16x128xf32, #tpu.memory_space<vmem>>, vector<16x128xf32>
    %cst = arith.constant dense<0.000000e+00> : vector<8x128xf32>
    %2 = tpu.matmul %0, %1, %cst {dimension_numbers = #tpu.dot_dimension_numbers<[1], [0], [0], [1], [0, 0, 1, 1], [], []>} : vector<8x16xf32>, vector<16x128xf32>, vector<8x128xf32> -> vector<8x128xf32>
    %c0_3 = arith.constant 0 : index
    %c0_4 = arith.constant 0 : index
    %3 = vector.load %arg3[%c0_3, %c0_4] : memref<1x128xf32, #tpu.memory_space<vmem>>, vector<1x128xf32>
    %4 = vector.broadcast %3 : vector<1x128xf32> to vector<8x128xf32>
    %5 = arith.addf %2, %4 : vector<8x128xf32>
    %cst_5 = arith.constant 0.000000e+00 : f32
    %6 = vector.broadcast %cst_5 : f32 to vector<8x128xf32>
    %7 = arith.maximumf %5, %6 : vector<8x128xf32>
    %c0_6 = arith.constant 0 : index
    %c0_7 = arith.constant 0 : index
    %8 = vector.load %arg4[%c0_6, %c0_7] : memref<128x128xf32, #tpu.memory_space<vmem>>, vector<128x128xf32>
    %cst_8 = arith.constant dense<0.000000e+00> : vector<8x128xf32>
    %9 = tpu.matmul %7, %8, %cst_8 {dimension_numbers = #tpu.dot_dimension_numbers<[1], [0], [0], [1], [0, 0, 1, 1], [], []>} : vector<8x128xf32>, vector<128x128xf32>, vector<8x128xf32> -> vector<8x128xf32>
    %c0_9 = arith.constant 0 : index
    %c0_10 = arith.constant 0 : index
    %10 = vector.load %arg5[%c0_9, %c0_10] : memref<1x128xf32, #tpu.memory_space<vmem>>, vector<1x128xf32>
    %11 = vector.broadcast %10 : vector<1x128xf32> to vector<8x128xf32>
    %12 = arith.addf %9, %11 : vector<8x128xf32>
    %13 = tpu.iota {dimensions = array<i32: 1>} : vector<8x128xi32>
    %c4_i32 = arith.constant 4 : i32
    %14 = vector.broadcast %c4_i32 : i32 to vector<8x128xi32>
    %15 = arith.cmpi slt, %13, %14 : vector<8x128xi32>
    %cst_11 = arith.constant -1.000000e+30 : f32
    %16 = vector.broadcast %cst_11 : f32 to vector<8x128xf32>
    %17 = arith.select %15, %12, %16 : vector<8x128xi1>, vector<8x128xf32>
    %cst_12 = arith.constant dense<0xFF800000> : vector<8xf32>
    %18 = vector.multi_reduction <maximumf>, %17, %cst_12 [1] : vector<8x128xf32> to vector<8xf32>
    %19 = vector.shape_cast %18 : vector<8xf32> to vector<8x1xf32>
    %20 = vector.broadcast %19 : vector<8x1xf32> to vector<8x128xf32>
    %21 = arith.subf %17, %20 : vector<8x128xf32>
    %22 = math.exp %21 : vector<8x128xf32>
    %cst_13 = arith.constant dense<0.000000e+00> : vector<8xf32>
    %23 = vector.multi_reduction <add>, %22, %cst_13 [1] : vector<8x128xf32> to vector<8xf32>
    %24 = vector.shape_cast %23 : vector<8xf32> to vector<8x1xf32>
    %25 = tpu.reciprocal %24 {approx = true} : vector<8x1xf32> -> vector<8x1xf32>
    %26 = arith.mulf %24, %25 : vector<8x1xf32>
    %cst_14 = arith.constant 2.000000e+00 : f32
    %27 = vector.broadcast %cst_14 : f32 to vector<8x1xf32>
    %28 = arith.subf %27, %26 : vector<8x1xf32>
    %29 = arith.mulf %25, %28 : vector<8x1xf32>
    %30 = vector.broadcast %29 : vector<8x1xf32> to vector<8x128xf32>
    %31 = arith.mulf %22, %30 : vector<8x128xf32>
    %32 = arith.select %15, %31, %12 : vector<8x128xi1>, vector<8x128xf32>
    %c0_15 = arith.constant 0 : index
    %c0_16 = arith.constant 0 : index
    %33 = vector.load %arg6[%c0_15, %c0_16] : memref<8x128xf32, #tpu.memory_space<vmem>>, vector<8x128xf32>
    tpu.vector_store %arg6[%c0_15, %c0_16], %32 {strides = array<i32>} : memref<8x128xf32, #tpu.memory_space<vmem>>, vector<8x128xf32>,
    return
  }
  func.func @transform_0(%arg0: i32) -> (i32, i32) {
    %c0_i32 = arith.constant 0 : i32
    %c0_i32_0 = arith.constant 0 : i32
    return %arg0, %c0_i32 : i32, i32
  }
  func.func @transform_1(%arg0: i32) -> (i32, i32) {
    %c0_i32 = arith.constant 0 : i32
    %c0_i32_0 = arith.constant 0 : i32
    %c0_i32_1 = arith.constant 0 : i32
    return %c0_i32, %c0_i32_0 : i32, i32
  }
  func.func @transform_2(%arg0: i32) -> (i32, i32) {
    %c0_i32 = arith.constant 0 : i32
    %c0_i32_0 = arith.constant 0 : i32
    %c0_i32_1 = arith.constant 0 : i32
    return %c0_i32, %c0_i32_0 : i32, i32
  }
  func.func @transform_3(%arg0: i32) -> (i32, i32) {
    %c0_i32 = arith.constant 0 : i32
    %c0_i32_0 = arith.constant 0 : i32
    %c0_i32_1 = arith.constant 0 : i32
    return %c0_i32, %c0_i32_0 : i32, i32
  }
  func.func @transform_4(%arg0: i32) -> (i32, i32) {
    %c0_i32 = arith.constant 0 : i32
    %c0_i32_0 = arith.constant 0 : i32
    %c0_i32_1 = arith.constant 0 : i32
    return %c0_i32, %c0_i32_0 : i32, i32
  }
  func.func @transform_5(%arg0: i32) -> (i32, i32) {
    %c0_i32 = arith.constant 0 : i32
    %c0_i32_0 = arith.constant 0 : i32
    return %arg0, %c0_i32 : i32, i32
  }
}

</mosaic_0001>

<bundles_post_ra>
// kernel: tpu_custom_call.1
= control target key start
LH: loop header
LB: loop body
LE: loop exit
PB: predicated region body
PF: predicated region fallthrough
CT: control target
= control target key end

     0   :  { %10 = vsyncpa [#allocation3], 0  ;;  %s572_s0 = inlined_call_operand.hbm [shape: f32[8,16], index: 0, kind: input, shape index: {}]   ;;  %s573_s1 = inlined_call_operand.hbm [shape: f32[16,128], index: 1, kind: input, shape index: {}]   ;;  %s574_s2 = inlined_call_operand.vmem [shape: f32[1,128], index: 2, kind: input, shape index: {}]   ;;  %s575_s3 = inlined_call_operand.hbm [shape: f32[128,128], index: 3, kind: input, shape index: {}]   ;;  %s576_s4 = inlined_call_operand.vmem [shape: f32[1,128], index: 4, kind: input, shape index: {}]   ;;  %s577_s5 = inlined_call_operand.hbm [shape: f32[8,128], index: 5, kind: output, shape index: {}]  }
   0x1   :  { %11 = vsyncpa [#allocation6], 0 }
   0x2   :  { %12 = vsyncpa [#allocation4], 0  ;;  %s471_s18 = smov [#allocation5]   ;;  %s377_s22 = scalar_lea.hbm %s573_s1, 256 }
   0x3   :  { %s28_s19 = sshll.u32 %s471_s18, 4  ;;  %p378_p0 = scmp.ne.s32.totalorder %s573_s1, %s377_s22  ;;  %s29_s19 = int_to_ptr.vmem [resolvable:$true] %s28_s19 }
   0x4   :  { %p381_p1 = scmp.lt.u32.totalorder %s377_s22, %s573_s1 }
   0x6   :  { %p383_p2 = pnand %p381_p1, %p378_p0 }
   0x8   :  { %386 = shalt.err (!%p383_p2)
}
   0x9   :  { %s387_s27 = scalar_lea.vmem %s29_s19, 256  ;;  %p392_p4 = scmp.lt.s32.totalorder %s29_s19, %s29_s19 }
   0xa   :  { %p388_p3 = scmp.ne.s32.totalorder %s29_s19, %s387_s27  ;;  %p393_p5 = scmp.lt.s32.totalorder %s387_s27, %s387_s27 }
   0xc   :  { %p394_p6 = por %p393_p5, %p392_p4 }
   0xe   :  { %p395_p7 = pnand %p394_p6, %p388_p3 }
  0x10   :  { %398 = shalt.err (!%p395_p7)
}
  0x11   :  { %s472_s28 = smov 128   ;;  %s473_s29 = smov 8  }
  0x12   :  { %34 = dma.hbm_to_vmem [thread:$0]  %s573_s1, 256, %s29_s19, [#allocation6], %s472_s28, %s472_s28, %s473_s29  }
  0x13   :  { %s474_s7 = smov [#allocation2]   ;;  %s475_s9 = smov [#allocation7]  }
  0x14   :  { %s19_s8 = sshll.u32 %s474_s7, 4  ;;  %s42_s10 = sshll.u32 %s475_s9, 4  ;;  %s20_s8 = int_to_ptr.vmem [resolvable:$true] %s19_s8  ;;  %s43_s10 = int_to_ptr.vmem [resolvable:$true] %s42_s10 }
  0x15   :  { %s399_s13 = scalar_lea.hbm %s572_s0, 128 }
  0x16   :  { %p400_p8 = scmp.ne.s32.totalorder %s572_s0, %s399_s13  ;;  %p403_p9 = scmp.lt.u32.totalorder %s399_s13, %s572_s0 }
  0x18   :  { %p405_p10 = pnand %p403_p9, %p400_p8 }
  0x1a   :  { %408 = shalt.err (!%p405_p10)
}
  0x1b   :  { %s409_s1 = scalar_lea.vmem %s20_s8, 128  ;;  %p414_p12 = scmp.lt.s32.totalorder %s20_s8, %s20_s8 }
  0x1c   :  { %p410_p11 = scmp.ne.s32.totalorder %s20_s8, %s409_s1  ;;  %p415_p13 = scmp.lt.s32.totalorder %s409_s1, %s409_s1 }
  0x1e   :  { %p416_p0 = por %p415_p13, %p414_p12 }
  0x20   :  { %p417_p1 = pnand %p416_p0, %p410_p11 }
  0x22   :  { %420 = shalt.err (!%p417_p1)
}
  0x23   :  { %22 = dma.hbm_to_vmem [thread:$0]  %s572_s0, 128, %s20_s8, [#allocation3]  }
  0x24   :  { %s421_s22 = scalar_lea.hbm %s575_s3, 2048 }
  0x25   :  { %p422_p2 = scmp.ne.s32.totalorder %s575_s3, %s421_s22  ;;  %p425_p3 = scmp.lt.u32.totalorder %s421_s22, %s575_s3 }
  0x27   :  { %p427_p4 = pnand %p425_p3, %p422_p2 }
  0x29   :  { %430 = shalt.err (!%p427_p4)
}
  0x2a   :  { %s431_s27 = scalar_lea.vmem %s43_s10, 2048  ;;  %p436_p6 = scmp.lt.s32.totalorder %s43_s10, %s43_s10 }
  0x2b   :  { %p432_p5 = scmp.ne.s32.totalorder %s43_s10, %s431_s27  ;;  %p437_p7 = scmp.lt.s32.totalorder %s431_s27, %s431_s27 }
  0x2d   :  { %p438_p8 = por %p437_p7, %p436_p6 }
  0x2f   :  { %p439_p9 = pnand %p438_p8, %p432_p5 }
  0x31   :  { %442 = shalt.err (!%p439_p9)
}
  0x32   :  { %48 = dma.hbm_to_vmem [thread:$0]  %s575_s3, 2048, %s43_s10, [#allocation6], %s472_s28, %s472_s28, %s473_s29  }
  0x33   :  { %465 = dma.done.wait [#allocation3], 128  }
  0x34   :  { %466 = vsyncadd [#allocation3], 4294967168 }
  0x35   :  { %467 = dma.done.wait [#allocation6], 2304  }
  0x36   :  { %468 = vsyncadd [#allocation6], 4294964992  ;;  %v476_v0 = vmov 0.0|0.0   ;;  %vm477_vm0 = vmmov 0   ;;  %v478_v1 = vmov 0.0   ;;  %v61_v2 = vld [vmem:[#allocation5] sm:$0xff]  ;;  %v238_v35 = vlaneseq }
  0x37   :  { %337 = vmatprep.subr.bf16.mxu0 %v476_v0  ;;  %299 = vmatprep.mubr.msk.f32.mxu0 %vm477_vm0, %v478_v1  ;;  %v62_v3 = vld [vmem:[#allocation5 + $0x8] sm:$0xff]  ;;  %v145_v5 = vld [vmem:[#allocation7] sm:$0xff]  ;;  %v146_v6 = vld [vmem:[#allocation7 + $0x8] sm:$0xff]  ;;  %vm70_vm1 = vcmask 130048  }
  0x38   :  { %340 = vmatprep.subr.bf16.mxu1 %v476_v0  ;;  %334 = vmatprep.mubr.msk.f32.mxu1 %vm477_vm0, %v478_v1  ;;  %v338_v4 = vpack.c.bf16 %v62_v3, %v61_v2  ;;  %v147_v7 = vld [vmem:[#allocation7 + $0x10] sm:$0xff]  ;;  %v341_v8 = vpack.c.bf16 %v146_v6, %v145_v5  ;;  %v148_v9 = vld [vmem:[#allocation7 + $0x18] sm:$0xff]  ;;  %v60_v10 = vld [vmem:[#allocation2] sm:$0xff]  ;;  %v239_v36 = vand.u32 127, %v238_v35 }
  0x39   :  { %v344_v11 = vpack.c.bf16 %v148_v9, %v147_v7  ;;  %v149_v12 = vld [vmem:[#allocation7 + $0x20] sm:$0xff]  ;;  %v150_v13 = vld [vmem:[#allocation7 + $0x28] sm:$0xff]  ;;  %v151_v15 = vld [vmem:[#allocation7 + $0x30] sm:$0xff] }
  0x3a   :  { %339 = vmatpush3.bf16.msra.mxu0 %v338_v4  ;;  %342 = vmatpush3.bf16.msra.mxu1 %v341_v8  ;;  %v347_v14 = vpack.c.bf16 %v150_v13, %v149_v12  ;;  %v152_v16 = vld [vmem:[#allocation7 + $0x38] sm:$0xff]  ;;  %v153_v18 = vld [vmem:[#allocation7 + $0x40] sm:$0xff]  ;;  %v154_v19 = vld [vmem:[#allocation7 + $0x48] sm:$0xff]  ;;  %vm240_vm2 = vcmp.lt.s32.totalorder %v239_v36, 4 }
  0x3b   :  { %343 = vmatprep.subr.bf16.mxu1 %v476_v0  ;;  %v350_v17 = vpack.c.bf16 %v152_v16, %v151_v15  ;;  %v353_v20 = vpack.c.bf16 %v154_v19, %v153_v18  ;;  %v155_v21 = vld [vmem:[#allocation7 + $0x50] sm:$0xff]  ;;  %v156_v22 = vld [vmem:[#allocation7 + $0x58] sm:$0xff]  ;;  %v157_v24 = vld [vmem:[#allocation7 + $0x60] sm:$0xff] }
  0x3c   :  { %v356_v23 = vpack.c.bf16 %v156_v22, %v155_v21  ;;  %v158_v25 = vld [vmem:[#allocation7 + $0x68] sm:$0xff]  ;;  %v159_v27 = vld [vmem:[#allocation7 + $0x70] sm:$0xff]  ;;  %v160_v28 = vld [vmem:[#allocation7 + $0x78] sm:$0xff] }
  0x3d   :  { %300 = vmatmul.mubr.msk.f32.vlgmr.msra.gmra.mrb[0].mxu0 %vm70_vm1, %v60_v10  ;;  %v359_v26 = vpack.c.bf16 %v158_v25, %v157_v24  ;;  %v362_v29 = vpack.c.bf16 %v160_v28, %v159_v27  ;;  %v272_v30 = vld [vmem:[%s574_s2] ss:$0 sm:$0xff]  ;;  %s479_s2 = smov [#allocation8]  }
  0x3e   :  { %345 = vmatpush3.bf16.msra.mxu1 %v344_v11  ;;  %v274_v37 = vld [vmem:[%s576_s4] ss:$0 sm:$0xff]  ;;  %s262_s4 = sshll.u32 %s479_s2, 4  ;;  %s263_s4 = int_to_ptr.vmem [resolvable:$true] %s262_s4 }
  0x3f   :  { %346 = vmatprep.subr.bf16.mxu1 %v476_v0  ;;  %s443_s7 = scalar_lea.vmem %s263_s4, 128  ;;  %p448_p11 = scmp.lt.s32.totalorder %s263_s4, %s263_s4 }
  0x40   :  { %p444_p10 = scmp.ne.s32.totalorder %s263_s4, %s443_s7  ;;  %p449_p12 = scmp.lt.s32.totalorder %s443_s7, %s443_s7 }
  0x42   :  { %348 = vmatpush3.bf16.msra.mxu1 %v347_v14  ;;  %p450_p13 = por %p449_p12, %p448_p11 }
  0x43   :  { %349 = vmatprep.subr.bf16.mxu1 %v476_v0 }
  0x44   :  { %p451_p0 = pnand %p450_p13, %p444_p10 }
  0x46   :  { %351 = vmatpush3.bf16.msra.mxu1 %v350_v17 }
  0x47   :  { %352 = vmatprep.subr.bf16.mxu1 %v476_v0 }
  0x4a   :  { %354 = vmatpush3.bf16.msra.mxu1 %v353_v20 }
  0x4b   :  { %355 = vmatprep.subr.bf16.mxu1 %v476_v0 }
  0x4e   :  { %357 = vmatpush3.bf16.msra.mxu1 %v356_v23 }
  0x4f   :  { %358 = vmatprep.subr.bf16.mxu1 %v476_v0 }
  0x52   :  { %360 = vmatpush3.bf16.msra.mxu1 %v359_v26 }
  0x53   :  { %361 = vmatprep.subr.bf16.mxu1 %v476_v0 }
  0x56   :  { %363 = vmatpush3.bf16.msra.mxu1 %v362_v29 }
 0x110   :  { %v140_v31 = vpop.f32.mrb[0].mxu0 }
 0x111   :  { %v141_v32 = vadd.f32 %v272_v30, %v140_v31  ;;  %v301_v33 = vpop.f32.mrb[1].mxu0 }
 0x113   :  { %v144_v34 = vmax.f32 %v141_v32, 0.0 }
 0x115   :  { %335 = vmatmul.mubr.f32.vlgmr.msra.gmra.mrb[0].mxu1 %v144_v34 }
 0x1e8   :  { %v234_v38 = vpop.f32.mrb[0].mxu1 }
 0x1e9   :  { %v235_v39 = vadd.f32 %v274_v37, %v234_v38  ;;  %v336_v40 = vpop.f32.mrb[1].mxu1 }
 0x1eb   :  { %v241_v41 = vsel %vm240_vm2, %v235_v39, -1e+30 }
 0x1ec   :  { %242 = vmax.xlane.f32.xlu0 %v241_v41 }
 0x279   :  { %v243_v42 = vpop.xlane.xlu0 %242 }
 0x27a   :  { %v244_v43 = vsub.f32 %v241_v41, %v243_v42 }
 0x27c   :  { %v245_v44 = vmul.f32 1.442695, %v244_v43 }
 0x27e   :  { %373 = vpow2.f32 %v245_v44 }
 0x288   :  { %v374_v45 = vpop.eup %373 }
 0x289   :  { %247 = vadd.xlane.f32.xlu0 %v374_v45 }
 0x316   :  { %v248_v46 = vpop.xlane.xlu0 %247 }
 0x317   :  { %375 = vrcp.f32 %v248_v46 }
 0x321   :  { %v376_v47 = vpop.eup %375 }
 0x322   :  { %v250_v48 = vmul.f32 %v376_v47, %v248_v46 }
 0x324   :  { %v251_v49 = vsub.f32 2.0, %v250_v48 }
 0x326   :  { %v252_v50 = vmul.f32 %v376_v47, %v251_v49 }
 0x328   :  { %v253_v51 = vmul.f32 %v374_v45, %v252_v50 }
 0x32a   :  { %v254_v52 = vsel %vm240_vm2, %v253_v51, %v235_v39 }
 0x32b   :  { %255 = vst [vmem:[#allocation8] sm:$0xff] %v254_v52 }
 0x32c   :  { %454 = shalt.err (!%p451_p0)
}
 0x32d   :  { %s455_s10 = scalar_lea.hbm %s577_s5, 128 }
 0x32e   :  { %p456_p1 = scmp.ne.s32.totalorder %s577_s5, %s455_s10  ;;  %p459_p2 = scmp.lt.u32.totalorder %s455_s10, %s577_s5 }
 0x330   :  { %p461_p3 = pnand %p459_p2, %p456_p1 }
 0x332   :  { %464 = shalt.err (!%p461_p3)
}
 0x333   :  { %265 = dma.vmem_to_hbm [thread:$0]  %s263_s4, 128, %s577_s5, [#allocation4]  }
 0x334   :  { %469 = dma.done.wait [#allocation4], 128  }
 0x335   :  { %470 = vsyncadd [#allocation4], 4294967168 }
 0x336   :  { %269 = vsyncpa [#allocation3], 1 }
 0x337   :  { %270 = vsyncpa [#allocation6], 1 }
 0x338   :  { %271 = vsyncpa [#allocation4], 1 }

</bundles_post_ra>
